<compile_context>
chip_gen: v7x
topology: tpu7x:2x2x1
jax: 0.10.0
libtpu: 0.0.40
codegen_flags: <defaults>
</compile_context>

<pallas_src>
import math

import numpy as np
import jax
import jax.numpy as jnp
from jax.experimental import pallas as pl
from jax.experimental.pallas import tpu as pltpu


_NSTAT = 128  # lane-dense stats row width (one unmasked 128-lane store)


def _round_up(x, m):
    return ((x + m - 1) // m) * m


# ------------------------------ fused Pallas kernel ------------------------------

def _make_fused_loss_kernel(num_levels, num_lik, write_mse):
    """Ref layout per grid step (n, c):
       inputs : [f_0, t_0, m_0, ..., f_{L-1}, t_{L-1}, m_{L-1}, lik_0, ..., lik_{K-1}]
                f/t   : (1, TILE_C, HWp_l) blocks, any float dtype (upcast in-kernel)
                m     : (1, 1, HWp_l) f32 block, broadcast across TILE_C in-kernel
                lik_k : (rows_k, 128) full array, fetched once (constant index map)
       outputs: [mse_0 .. mse_{L-1}] (if write_mse) blocks (1, TILE_C, HWp_l)
                stats : (8, _NSTAT) block per n (all 8 sublanes carry the same row)
       scratch: acc (8, _NSTAT) f32 accumulator, resident across the c axis.
       stats lanes: [2l] = sum(mask*(f-t)^2), [2l+1] = sum((f-t)^2),
                    [2L+k] = sum(log(lik_k)) (only in the n == 0 row)."""
    n_in = 3 * num_levels + num_lik

    def kernel(*refs):
        in_refs = refs[:n_in]
        acc_ref = refs[-1]
        stats_ref = refs[-2]
        mse_refs = refs[n_in:n_in + num_levels] if write_mse else ()

        n = pl.program_id(0)
        c = pl.program_id(1)
        last_c = pl.num_programs(1) - 1

        @pl.when(c == 0)
        def _init():
            acc_ref[...] = jnp.zeros_like(acc_ref)

        lane_idx = jax.lax.broadcasted_iota(jnp.int32, (1, _NSTAT), 1)
        partial = jnp.zeros((1, _NSTAT), jnp.float32)
        for l in range(num_levels):
            f = in_refs[3 * l][...].astype(jnp.float32)        # (1, TC, HWp)
            t = in_refs[3 * l + 1][...].astype(jnp.float32)    # (1, TC, HWp)
            m = in_refs[3 * l + 2][...].astype(jnp.float32)    # (1, 1, HWp)
            diff = f - t
            sq = diff * diff
            masked = sq * m                                    # sublane broadcast over TC
            if write_mse:
                mse_refs[l][...] = masked.astype(mse_refs[l].dtype)
            # reduce: drop unit lead dim, then proven 2-step lane/sublane reduce (XLU)
            sq2 = jnp.sum(sq, axis=0)                          # (TC, HWp)
            mk2 = jnp.sum(masked, axis=0)                      # (TC, HWp)
            s_sq = jnp.sum(jnp.sum(sq2, axis=1, keepdims=True), axis=0, keepdims=True)
            s_mk = jnp.sum(jnp.sum(mk2, axis=1, keepdims=True), axis=0, keepdims=True)
            partial = jnp.where(lane_idx == 2 * l, s_mk, partial)
            partial = jnp.where(lane_idx == 2 * l + 1, s_sq, partial)
        acc_ref[...] += partial                                # broadcast over 8 sublanes

        if num_lik:
            @pl.when(jnp.logical_and(n == 0, c == 0))
            def _lik():
                lp = jnp.zeros((1, _NSTAT), jnp.float32)
                for k in range(num_lik):
                    lx = jnp.log(in_refs[3 * num_levels + k][...].astype(jnp.float32))
                    s = jnp.sum(jnp.sum(lx, axis=1, keepdims=True), axis=0, keepdims=True)
                    lp = jnp.where(lane_idx == 2 * num_levels + k, s, lp)
                acc_ref[...] += lp

        @pl.when(c == last_c)
        def _finalize():
            stats_ref[...] = acc_ref[...]                      # single unmasked store

    return kernel


def _pick_tile_c(C, hwps, in_itemsize, mse_itemsize, budget_bytes):
    """Largest channel tile that divides C, is a multiple of 8 (or == C), and keeps the
    double-buffered per-step working set under budget."""
    cands = sorted({d for d in range(1, C + 1) if C % d == 0 and (d % 8 == 0 or d == C)})
    best = cands[0]
    for d in cands:
        per_step = 0
        for hwp in hwps:
            per_step += d * hwp * (2 * in_itemsize + mse_itemsize)   # f + t + mse out
            per_step += 4 * hwp                                      # mask row (f32)
        if 2 * per_step <= budget_bytes:                              # double buffered
            best = d
    return best


def fused_loss_stats(features, targets, masks, likelihoods, *,
                     return_mse_tensors=True, mse_dtype=None,
                     vmem_budget_bytes=24 * 1024 * 1024):
    """Single row-tiled pallas_call over all levels + likelihoods.
    Returns (list of masked-mse NCHW tensors or None, stats vector of length 128)."""
    num_levels = len(features)
    num_lik = len(likelihoods)
    assert 2 * num_levels + num_lik <= _NSTAT
    N, C = features[0].shape[0], features[0].shape[1]
    if mse_dtype is None:
        mse_dtype = features[0].dtype   # pass jnp.bfloat16 in training to halve writeback

    hws, hwps = [], []
    for f, t, m in zip(features, targets, masks):
        assert f.shape == t.shape, "feature/target shape mismatch"
        # TODO(synk): per-level channel counts would need per-level grids; FPN shares C.
        assert f.shape[0] == N and f.shape[1] == C, "all pyramid levels must share (N, C)"
        assert m.shape == (N, 1, f.shape[2], f.shape[3]), "mask/feature spatial mismatch"
        hw = f.shape[2] * f.shape[3]
        hws.append(hw)
        hwps.append(_round_up(hw, 128))

    in_itemsize = jnp.dtype(features[0].dtype).itemsize
    mse_itemsize = jnp.dtype(mse_dtype).itemsize if return_mse_tensors else 0
    tile_c = _pick_tile_c(C, hwps, in_itemsize, mse_itemsize, vmem_budget_bytes)
    n_ct = C // tile_c
    grid = (N, n_ct)   # reduction (C tiles) last, marked "arbitrary"

    inputs, in_specs = [], []
    for l, (f, t, m) in enumerate(zip(features, targets, masks)):
        hw, hwp = hws[l], hwps[l]
        pad = hwp - hw
        f3 = f.reshape(N, C, hw)
        t3 = t.reshape(N, C, hw)
        m3 = m.astype(jnp.float32).reshape(N, 1, hw)          # NOT broadcast to C
        if pad:
            f3 = jnp.pad(f3, ((0, 0), (0, 0), (0, pad)))      # zeros -> zero contribution
            t3 = jnp.pad(t3, ((0, 0), (0, 0), (0, pad)))
            m3 = jnp.pad(m3, ((0, 0), (0, 0), (0, pad)))
        inputs += [f3, t3, m3]
        blk = pl.BlockSpec((1, tile_c, hwp), lambda n, c: (n, c, 0))
        mblk = pl.BlockSpec((1, 1, hwp), lambda n, c: (n, 0, 0))
        in_specs += [blk, blk, mblk]

    lik_elems = 0
    for lk in likelihoods:
        flat = lk.reshape(-1)
        size = flat.size
        p = _round_up(size, 128)
        if p > size:
            flat = jnp.pad(flat, (0, p - size), constant_values=1.0)   # log(1) = 0
        lik2 = flat.reshape(p // 128, 128)                             # sublane+lane dense
        lik_elems += p
        inputs.append(lik2)
        in_specs.append(pl.BlockSpec(lik2.shape, lambda n, c: (0, 0)))  # fetched once

    out_shapes, out_specs = [], []
    if return_mse_tensors:
        for hwp in hwps:
            out_shapes.append(jax.ShapeDtypeStruct((N, C, hwp), mse_dtype))
            out_specs.append(pl.BlockSpec((1, tile_c, hwp), lambda n, c: (n, c, 0)))
    # per-n stats rows (8 identical sublanes each so the block conforms to (8, 128))
    out_shapes.append(jax.ShapeDtypeStruct((N * 8, _NSTAT), jnp.float32))
    out_specs.append(pl.BlockSpec((8, _NSTAT), lambda n, c: (n, 0)))

    # roofline hints for XLA scheduling
    total_elems = sum(N * C * hwp for hwp in hwps)
    in_bytes = sum(int(np.prod(x.shape)) * jnp.dtype(x.dtype).itemsize for x in inputs)
    out_bytes = sum(int(np.prod(s.shape)) * jnp.dtype(s.dtype).itemsize for s in out_shapes)
    cost = pl.CostEstimate(flops=5 * total_elems,
                           transcendentals=lik_elems,
                           bytes_accessed=in_bytes + out_bytes)

    # scoped VMEM limit sized to the chosen tiles (default scoped limit is 16/32 MiB)
    per_step = sum(tile_c * hwp * (2 * in_itemsize + mse_itemsize) + 4 * hwp for hwp in hwps)
    lik_bytes = sum(int(np.prod(x.shape)) * jnp.dtype(x.dtype).itemsize
                    for x in inputs[3 * num_levels:])
    vmem_limit = int(min(64 * 1024 * 1024,
                         max(32 * 1024 * 1024,
                             2 * per_step + 2 * lik_bytes + (4 << 20))))

    outs = pl.pallas_call(
        _make_fused_loss_kernel(num_levels, num_lik, return_mse_tensors),
        out_shape=tuple(out_shapes),
        grid_spec=pltpu.PrefetchScalarGridSpec(
            num_scalar_prefetch=0,
            grid=grid,
            in_specs=in_specs,
            out_specs=tuple(out_specs),
            scratch_shapes=[pltpu.VMEM((8, _NSTAT), jnp.float32)]),
        compiler_params=pltpu.CompilerParams(
            dimension_semantics=("parallel", "arbitrary"),   # N across cores on v7x
            vmem_limit_bytes=vmem_limit),
        cost_estimate=cost,
    )(*inputs)

    stats_rows = outs[-1].reshape(N, 8, _NSTAT)[:, 0, :]      # one row per n
    stats = jnp.sum(stats_rows, axis=0)                       # (128,) f32

    mse_tensors = None
    if return_mse_tensors:
        mse_tensors = []
        for l, f in enumerate(features):
            Nn, Cc, H, W = f.shape
            mse_tensors.append(outs[l][:, :, :hws[l]].reshape(Nn, Cc, H, W))
    return mse_tensors, stats


# --------------- antialiased bilinear downsample (precomputed weights) -----------

def _aa_bilinear_weights(in_size, scale_factor):
    """Separable 1-D weight matrix reproducing torch's antialiased bilinear resize
    (align_corners=False, scale_factor given, recompute_scale_factor=None)."""
    out_size = int(math.floor(in_size * scale_factor))
    scale = 1.0 / scale_factor                 # torch uses 1/scale_factor
    support = scale if scale >= 1.0 else 1.0   # bilinear filter support = 1, scaled
    invscale = 1.0 / scale if scale >= 1.0 else 1.0
    Wmat = np.zeros((out_size, in_size), dtype=np.float64)
    for i in range(out_size):
        center = scale * (i + 0.5)
        xmin = max(int(center - support + 0.5), 0)
        xmax = min(int(center + support + 0.5), in_size)
        w = np.array(
            [max(0.0, 1.0 - abs((x - center + 0.5) * invscale)) for x in range(xmin, xmax)],
            dtype=np.float64,
        )
        Wmat[i, xmin:xmax] = w / w.sum()
    return jnp.asarray(Wmat, dtype=jnp.float32)


# ------------------------------- forward pass -------------------------------------

def spatial_medo_loss(output, target, mask, lmbda=0.01, mask_coef=1.0,
                      return_mse_tensors=True, mse_dtype=None):
    out = {}

    # matches the torch module: num_pixels sums N*H*W over every pyramid level
    num_pixels = 0
    for p in target:
        N, _, H, W = p.shape
        num_pixels += N * H * W

    # mask pyramid (tiny; plain-JAX glue with torch-equivalent separable AA weights)
    p2_mask = jnp.clip(1.0 - (1.0 - mask.astype(jnp.float32)) * mask_coef, 1e-9, 1.0)
    p2_mask = p2_mask / jnp.max(p2_mask)
    Hm, Wm = mask.shape[2], mask.shape[3]
    masks = [p2_mask]
    for sf in (0.5, 0.25, 0.125):
        wh = _aa_bilinear_weights(Hm, sf)
        ww = _aa_bilinear_weights(Wm, sf)
        m = jnp.einsum('oh,nchw,pw->ncop', wh, p2_mask, ww)
        m = jnp.clip(m, 1e-8, 1.0)
        m = m / jnp.max(m)
        masks.append(m)

    features = list(output['features'])
    lik_list = list(output['likelihoods'].values())

    # single fused Pallas launch: all levels + likelihood log-sums
    mse_tensors, stats = fused_loss_stats(
        features, list(target), masks, lik_list,
        return_mse_tensors=return_mse_tensors, mse_dtype=mse_dtype)

    num_levels = len(features)
    bpp = jnp.float32(0.0)
    for k in range(len(lik_list)):
        bpp = bpp + stats[2 * num_levels + k] / (-math.log(2) * num_pixels)
    out['bpp_loss'] = bpp

    mse_loss = jnp.float32(0.0)
    for l, f in enumerate(features):
        lvl = l + 2
        numel = f.size
        if return_mse_tensors:
            out[f'p{lvl}_mseloss'] = mse_tensors[l]
        # device scalar (torch used .item(); kept on-device to avoid per-level host sync)
        out[f'p{lvl}_mse'] = stats[2 * l + 1] / numel
        mse_loss = mse_loss + stats[2 * l] / numel      # mean of masked mse per level
    out['mse_loss'] = mse_loss
    out['loss'] = lmbda * (255 ** 2) * out['mse_loss'] + out['bpp_loss']
    return out


# ----------------------------------- main ------------------------------------------

if __name__ == "__main__":
    key = jax.random.PRNGKey(0)
    N, C, H, W = 2, 4, 16, 16
    keys = jax.random.split(key, 12)

    # FPN-style feature pyramid p2..p5 (strides 1,2,4,8 relative to p2)
    feat_shapes = [(N, C, H // s, W // s) for s in (1, 2, 4, 8)]
    features = [jax.random.normal(keys[i], s, dtype=jnp.float32) for i, s in enumerate(feat_shapes)]
    targets = [jax.random.normal(keys[4 + i], s, dtype=jnp.float32) for i, s in enumerate(feat_shapes)]

    # spatial importance mask at p2 resolution, values in [0, 1]
    mask = jax.random.uniform(keys[8], (N, 1, H, W), dtype=jnp.float32)

    # latent likelihoods (values strictly in (0, 1])
    likelihoods = {
        'y': jax.random.uniform(keys[9], (N, 8, H // 4, W // 4), dtype=jnp.float32,
                                minval=0.01, maxval=1.0),
        'z': jax.random.uniform(keys[10], (N, 8, H // 8, W // 8), dtype=jnp.float32,
                                minval=0.01, maxval=1.0),
    }

    output = {'features': features, 'likelihoods': likelihoods}

    # no host syncs inside -> the whole forward is jittable and dispatches as one program
    loss_fn = jax.jit(spatial_medo_loss)
    out = loss_fn(output, targets, mask)
    jax.block_until_ready(out['loss'])
    jax.block_until_ready(out['p2_mseloss'])
    print("KERNEL_OK")
</pallas_src>

<mosaic_0001>
module attributes {stable_mosaic.version = 11 : i64} {
  func.func @kernel(%arg0: i32, %arg1: i32, %arg2: memref<1x4x256xf32, #tpu.memory_space<vmem>>, %arg3: memref<1x4x256xf32, #tpu.memory_space<vmem>>, %arg4: memref<1x1x256xf32, #tpu.memory_space<vmem>>, %arg5: memref<1x4x128xf32, #tpu.memory_space<vmem>>, %arg6: memref<1x4x128xf32, #tpu.memory_space<vmem>>, %arg7: memref<1x1x128xf32, #tpu.memory_space<vmem>>, %arg8: memref<1x4x128xf32, #tpu.memory_space<vmem>>, %arg9: memref<1x4x128xf32, #tpu.memory_space<vmem>>, %arg10: memref<1x1x128xf32, #tpu.memory_space<vmem>>, %arg11: memref<1x4x128xf32, #tpu.memory_space<vmem>>, %arg12: memref<1x4x128xf32, #tpu.memory_space<vmem>>, %arg13: memref<1x1x128xf32, #tpu.memory_space<vmem>>, %arg14: memref<2x128xf32, #tpu.memory_space<vmem>>, %arg15: memref<1x128xf32, #tpu.memory_space<vmem>>, %arg16: memref<1x4x256xf32, #tpu.memory_space<vmem>>, %arg17: memref<1x4x128xf32, #tpu.memory_space<vmem>>, %arg18: memref<1x4x128xf32, #tpu.memory_space<vmem>>, %arg19: memref<1x4x128xf32, #tpu.memory_space<vmem>>, %arg20: memref<8x128xf32, #tpu.memory_space<vmem>>, %arg21: memref<8x128xf32, #tpu.memory_space<vmem>>) attributes {dimension_semantics = [#tpu.dimension_semantics<parallel>, #tpu.dimension_semantics<arbitrary>], iteration_bounds = array<i64: 2, 1>, scalar_prefetch = 0 : i64, scratch_operands = 1 : i64, tpu.core_type = #tpu.core_type<tc>, window_params = [{transform_indices = @transform_0, window_bounds = array<i64: 1, 4, 256>}, {transform_indices = @transform_1, window_bounds = array<i64: 1, 4, 256>}, {transform_indices = @transform_2, window_bounds = array<i64: 1, 1, 256>}, {transform_indices = @transform_3, window_bounds = array<i64: 1, 4, 128>}, {transform_indices = @transform_4, window_bounds = array<i64: 1, 4, 128>}, {transform_indices = @transform_5, window_bounds = array<i64: 1, 1, 128>}, {transform_indices = @transform_6, window_bounds = array<i64: 1, 4, 128>}, {transform_indices = @transform_7, window_bounds = array<i64: 1, 4, 128>}, {transform_indices = @transform_8, window_bounds = array<i64: 1, 1, 128>}, {transform_indices = @transform_9, window_bounds = array<i64: 1, 4, 128>}, {transform_indices = @transform_10, window_bounds = array<i64: 1, 4, 128>}, {transform_indices = @transform_11, window_bounds = array<i64: 1, 1, 128>}, {pipeline_mode = #tpu.pipeline_mode<synchronous>, transform_indices = @transform_12, window_bounds = array<i64: 2, 128>}, {pipeline_mode = #tpu.pipeline_mode<synchronous>, transform_indices = @transform_13, window_bounds = array<i64: 1, 128>}, {transform_indices = @transform_14, window_bounds = array<i64: 1, 4, 256>}, {transform_indices = @transform_15, window_bounds = array<i64: 1, 4, 128>}, {transform_indices = @transform_16, window_bounds = array<i64: 1, 4, 128>}, {transform_indices = @transform_17, window_bounds = array<i64: 1, 4, 128>}, {transform_indices = @transform_18, window_bounds = array<i64: 8, 128>}]} {
    %c0_i32 = arith.constant 0 : i32
    %0 = arith.cmpi eq, %arg1, %c0_i32 : i32
    %1 = arith.extui %0 : i1 to i32
    %c0_i32_0 = arith.constant 0 : i32
    %2 = arith.cmpi ne, %1, %c0_i32_0 : i32
    scf.if %2 {
      %cst_82 = arith.constant 0.000000e+00 : f32
      %129 = vector.broadcast %cst_82 : f32 to vector<8x128xf32>
      %c0_83 = arith.constant 0 : index
      %c0_84 = arith.constant 0 : index
      %130 = vector.load %arg21[%c0_83, %c0_84] : memref<8x128xf32, #tpu.memory_space<vmem>>, vector<8x128xf32>
      tpu.vector_store %arg21[%c0_83, %c0_84], %129 {strides = array<i32>} : memref<8x128xf32, #tpu.memory_space<vmem>>, vector<8x128xf32>,
    } else {
    }
    %3 = tpu.iota {dimensions = array<i32: 1>} : vector<1x128xi32>
    %cst = arith.constant 0.000000e+00 : f32
    %4 = vector.broadcast %cst : f32 to vector<1x128xf32>
    %c0 = arith.constant 0 : index
    %c0_1 = arith.constant 0 : index
    %c0_2 = arith.constant 0 : index
    %5 = vector.load %arg2[%c0, %c0_1, %c0_2] : memref<1x4x256xf32, #tpu.memory_space<vmem>>, vector<1x4x256xf32>
    %c0_3 = arith.constant 0 : index
    %c0_4 = arith.constant 0 : index
    %c0_5 = arith.constant 0 : index
    %6 = vector.load %arg3[%c0_3, %c0_4, %c0_5] : memref<1x4x256xf32, #tpu.memory_space<vmem>>, vector<1x4x256xf32>
    %c0_6 = arith.constant 0 : index
    %c0_7 = arith.constant 0 : index
    %c0_8 = arith.constant 0 : index
    %7 = vector.load %arg4[%c0_6, %c0_7, %c0_8] : memref<1x1x256xf32, #tpu.memory_space<vmem>>, vector<1x1x256xf32>
    %8 = arith.subf %5, %6 : vector<1x4x256xf32>
    %9 = arith.mulf %8, %8 : vector<1x4x256xf32>
    %10 = vector.broadcast %7 : vector<1x1x256xf32> to vector<1x4x256xf32>
    %11 = arith.mulf %9, %10 : vector<1x4x256xf32>
    %c0_9 = arith.constant 0 : index
    %c0_10 = arith.constant 0 : index
    %c0_11 = arith.constant 0 : index
    %12 = vector.load %arg16[%c0_9, %c0_10, %c0_11] : memref<1x4x256xf32, #tpu.memory_space<vmem>>, vector<1x4x256xf32>
    tpu.vector_store %arg16[%c0_9, %c0_10, %c0_11], %11 {strides = array<i32>} : memref<1x4x256xf32, #tpu.memory_space<vmem>>, vector<1x4x256xf32>,
    %cst_12 = arith.constant dense<0.000000e+00> : vector<4x256xf32>
    %13 = vector.multi_reduction <add>, %9, %cst_12 [0] : vector<1x4x256xf32> to vector<4x256xf32>
    %cst_13 = arith.constant dense<0.000000e+00> : vector<4x256xf32>
    %14 = vector.multi_reduction <add>, %11, %cst_13 [0] : vector<1x4x256xf32> to vector<4x256xf32>
    %cst_14 = arith.constant dense<0.000000e+00> : vector<4xf32>
    %15 = vector.multi_reduction <add>, %13, %cst_14 [1] : vector<4x256xf32> to vector<4xf32>
    %16 = vector.shape_cast %15 : vector<4xf32> to vector<4x1xf32>
    %cst_15 = arith.constant dense<0.000000e+00> : vector<1xf32>
    %17 = vector.multi_reduction <add>, %16, %cst_15 [0] : vector<4x1xf32> to vector<1xf32>
    %18 = vector.shape_cast %17 : vector<1xf32> to vector<1x1xf32>
    %cst_16 = arith.constant dense<0.000000e+00> : vector<4xf32>
    %19 = vector.multi_reduction <add>, %14, %cst_16 [1] : vector<4x256xf32> to vector<4xf32>
    %20 = vector.shape_cast %19 : vector<4xf32> to vector<4x1xf32>
    %cst_17 = arith.constant dense<0.000000e+00> : vector<1xf32>
    %21 = vector.multi_reduction <add>, %20, %cst_17 [0] : vector<4x1xf32> to vector<1xf32>
    %22 = vector.shape_cast %21 : vector<1xf32> to vector<1x1xf32>
    %c0_i32_18 = arith.constant 0 : i32
    %23 = vector.broadcast %c0_i32_18 : i32 to vector<1x128xi32>
    %24 = arith.cmpi eq, %3, %23 : vector<1x128xi32>
    %25 = vector.shape_cast %22 : vector<1x1xf32> to vector<1x1xf32>
    %26 = vector.broadcast %25 : vector<1x1xf32> to vector<1x128xf32>
    %27 = arith.select %24, %26, %4 : vector<1x128xi1>, vector<1x128xf32>
    %c1_i32 = arith.constant 1 : i32
    %28 = vector.broadcast %c1_i32 : i32 to vector<1x128xi32>
    %29 = arith.cmpi eq, %3, %28 : vector<1x128xi32>
    %30 = vector.shape_cast %18 : vector<1x1xf32> to vector<1x1xf32>
    %31 = vector.broadcast %30 : vector<1x1xf32> to vector<1x128xf32>
    %32 = arith.select %29, %31, %27 : vector<1x128xi1>, vector<1x128xf32>
    %c0_19 = arith.constant 0 : index
    %c0_20 = arith.constant 0 : index
    %c0_21 = arith.constant 0 : index
    %33 = vector.load %arg5[%c0_19, %c0_20, %c0_21] : memref<1x4x128xf32, #tpu.memory_space<vmem>>, vector<1x4x128xf32>
    %c0_22 = arith.constant 0 : index
    %c0_23 = arith.constant 0 : index
    %c0_24 = arith.constant 0 : index
    %34 = vector.load %arg6[%c0_22, %c0_23, %c0_24] : memref<1x4x128xf32, #tpu.memory_space<vmem>>, vector<1x4x128xf32>
    %c0_25 = arith.constant 0 : index
    %c0_26 = arith.constant 0 : index
    %c0_27 = arith.constant 0 : index
    %35 = vector.load %arg7[%c0_25, %c0_26, %c0_27] : memref<1x1x128xf32, #tpu.memory_space<vmem>>, vector<1x1x128xf32>
    %36 = arith.subf %33, %34 : vector<1x4x128xf32>
    %37 = arith.mulf %36, %36 : vector<1x4x128xf32>
    %38 = vector.broadcast %35 : vector<1x1x128xf32> to vector<1x4x128xf32>
    %39 = arith.mulf %37, %38 : vector<1x4x128xf32>
    %c0_28 = arith.constant 0 : index
    %c0_29 = arith.constant 0 : index
    %c0_30 = arith.constant 0 : index
    %40 = vector.load %arg17[%c0_28, %c0_29, %c0_30] : memref<1x4x128xf32, #tpu.memory_space<vmem>>, vector<1x4x128xf32>
    tpu.vector_store %arg17[%c0_28, %c0_29, %c0_30], %39 {strides = array<i32>} : memref<1x4x128xf32, #tpu.memory_space<vmem>>, vector<1x4x128xf32>,
    %cst_31 = arith.constant dense<0.000000e+00> : vector<4x128xf32>
    %41 = vector.multi_reduction <add>, %37, %cst_31 [0] : vector<1x4x128xf32> to vector<4x128xf32>
    %cst_32 = arith.constant dense<0.000000e+00> : vector<4x128xf32>
    %42 = vector.multi_reduction <add>, %39, %cst_32 [0] : vector<1x4x128xf32> to vector<4x128xf32>
    %cst_33 = arith.constant dense<0.000000e+00> : vector<4xf32>
    %43 = vector.multi_reduction <add>, %41, %cst_33 [1] : vector<4x128xf32> to vector<4xf32>
    %44 = vector.shape_cast %43 : vector<4xf32> to vector<4x1xf32>
    %cst_34 = arith.constant dense<0.000000e+00> : vector<1xf32>
    %45 = vector.multi_reduction <add>, %44, %cst_34 [0] : vector<4x1xf32> to vector<1xf32>
    %46 = vector.shape_cast %45 : vector<1xf32> to vector<1x1xf32>
    %cst_35 = arith.constant dense<0.000000e+00> : vector<4xf32>
    %47 = vector.multi_reduction <add>, %42, %cst_35 [1] : vector<4x128xf32> to vector<4xf32>
    %48 = vector.shape_cast %47 : vector<4xf32> to vector<4x1xf32>
    %cst_36 = arith.constant dense<0.000000e+00> : vector<1xf32>
    %49 = vector.multi_reduction <add>, %48, %cst_36 [0] : vector<4x1xf32> to vector<1xf32>
    %50 = vector.shape_cast %49 : vector<1xf32> to vector<1x1xf32>
    %c2_i32 = arith.constant 2 : i32
    %51 = vector.broadcast %c2_i32 : i32 to vector<1x128xi32>
    %52 = arith.cmpi eq, %3, %51 : vector<1x128xi32>
    %53 = vector.shape_cast %50 : vector<1x1xf32> to vector<1x1xf32>
    %54 = vector.broadcast %53 : vector<1x1xf32> to vector<1x128xf32>
    %55 = arith.select %52, %54, %32 : vector<1x128xi1>, vector<1x128xf32>
    %c3_i32 = arith.constant 3 : i32
    %56 = vector.broadcast %c3_i32 : i32 to vector<1x128xi32>
    %57 = arith.cmpi eq, %3, %56 : vector<1x128xi32>
    %58 = vector.shape_cast %46 : vector<1x1xf32> to vector<1x1xf32>
    %59 = vector.broadcast %58 : vector<1x1xf32> to vector<1x128xf32>
    %60 = arith.select %57, %59, %55 : vector<1x128xi1>, vector<1x128xf32>
    %c0_37 = arith.constant 0 : index
    %c0_38 = arith.constant 0 : index
    %c0_39 = arith.constant 0 : index
    %61 = vector.load %arg8[%c0_37, %c0_38, %c0_39] : memref<1x4x128xf32, #tpu.memory_space<vmem>>, vector<1x4x128xf32>
    %c0_40 = arith.constant 0 : index
    %c0_41 = arith.constant 0 : index
    %c0_42 = arith.constant 0 : index
    %62 = vector.load %arg9[%c0_40, %c0_41, %c0_42] : memref<1x4x128xf32, #tpu.memory_space<vmem>>, vector<1x4x128xf32>
    %c0_43 = arith.constant 0 : index
    %c0_44 = arith.constant 0 : index
    %c0_45 = arith.constant 0 : index
    %63 = vector.load %arg10[%c0_43, %c0_44, %c0_45] : memref<1x1x128xf32, #tpu.memory_space<vmem>>, vector<1x1x128xf32>
    %64 = arith.subf %61, %62 : vector<1x4x128xf32>
    %65 = arith.mulf %64, %64 : vector<1x4x128xf32>
    %66 = vector.broadcast %63 : vector<1x1x128xf32> to vector<1x4x128xf32>
    %67 = arith.mulf %65, %66 : vector<1x4x128xf32>
    %c0_46 = arith.constant 0 : index
    %c0_47 = arith.constant 0 : index
    %c0_48 = arith.constant 0 : index
    %68 = vector.load %arg18[%c0_46, %c0_47, %c0_48] : memref<1x4x128xf32, #tpu.memory_space<vmem>>, vector<1x4x128xf32>
    tpu.vector_store %arg18[%c0_46, %c0_47, %c0_48], %67 {strides = array<i32>} : memref<1x4x128xf32, #tpu.memory_space<vmem>>, vector<1x4x128xf32>,
    %cst_49 = arith.constant dense<0.000000e+00> : vector<4x128xf32>
    %69 = vector.multi_reduction <add>, %65, %cst_49 [0] : vector<1x4x128xf32> to vector<4x128xf32>
    %cst_50 = arith.constant dense<0.000000e+00> : vector<4x128xf32>
    %70 = vector.multi_reduction <add>, %67, %cst_50 [0] : vector<1x4x128xf32> to vector<4x128xf32>
    %cst_51 = arith.constant dense<0.000000e+00> : vector<4xf32>
    %71 = vector.multi_reduction <add>, %69, %cst_51 [1] : vector<4x128xf32> to vector<4xf32>
    %72 = vector.shape_cast %71 : vector<4xf32> to vector<4x1xf32>
    %cst_52 = arith.constant dense<0.000000e+00> : vector<1xf32>
    %73 = vector.multi_reduction <add>, %72, %cst_52 [0] : vector<4x1xf32> to vector<1xf32>
    %74 = vector.shape_cast %73 : vector<1xf32> to vector<1x1xf32>
    %cst_53 = arith.constant dense<0.000000e+00> : vector<4xf32>
    %75 = vector.multi_reduction <add>, %70, %cst_53 [1] : vector<4x128xf32> to vector<4xf32>
    %76 = vector.shape_cast %75 : vector<4xf32> to vector<4x1xf32>
    %cst_54 = arith.constant dense<0.000000e+00> : vector<1xf32>
    %77 = vector.multi_reduction <add>, %76, %cst_54 [0] : vector<4x1xf32> to vector<1xf32>
    %78 = vector.shape_cast %77 : vector<1xf32> to vector<1x1xf32>
    %c4_i32 = arith.constant 4 : i32
    %79 = vector.broadcast %c4_i32 : i32 to vector<1x128xi32>
    %80 = arith.cmpi eq, %3, %79 : vector<1x128xi32>
    %81 = vector.shape_cast %78 : vector<1x1xf32> to vector<1x1xf32>
    %82 = vector.broadcast %81 : vector<1x1xf32> to vector<1x128xf32>
    %83 = arith.select %80, %82, %60 : vector<1x128xi1>, vector<1x128xf32>
    %c5_i32 = arith.constant 5 : i32
    %84 = vector.broadcast %c5_i32 : i32 to vector<1x128xi32>
    %85 = arith.cmpi eq, %3, %84 : vector<1x128xi32>
    %86 = vector.shape_cast %74 : vector<1x1xf32> to vector<1x1xf32>
    %87 = vector.broadcast %86 : vector<1x1xf32> to vector<1x128xf32>
    %88 = arith.select %85, %87, %83 : vector<1x128xi1>, vector<1x128xf32>
    %c0_55 = arith.constant 0 : index
    %c0_56 = arith.constant 0 : index
    %c0_57 = arith.constant 0 : index
    %89 = vector.load %arg11[%c0_55, %c0_56, %c0_57] : memref<1x4x128xf32, #tpu.memory_space<vmem>>, vector<1x4x128xf32>
    %c0_58 = arith.constant 0 : index
    %c0_59 = arith.constant 0 : index
    %c0_60 = arith.constant 0 : index
    %90 = vector.load %arg12[%c0_58, %c0_59, %c0_60] : memref<1x4x128xf32, #tpu.memory_space<vmem>>, vector<1x4x128xf32>
    %c0_61 = arith.constant 0 : index
    %c0_62 = arith.constant 0 : index
    %c0_63 = arith.constant 0 : index
    %91 = vector.load %arg13[%c0_61, %c0_62, %c0_63] : memref<1x1x128xf32, #tpu.memory_space<vmem>>, vector<1x1x128xf32>
    %92 = arith.subf %89, %90 : vector<1x4x128xf32>
    %93 = arith.mulf %92, %92 : vector<1x4x128xf32>
    %94 = vector.broadcast %91 : vector<1x1x128xf32> to vector<1x4x128xf32>
    %95 = arith.mulf %93, %94 : vector<1x4x128xf32>
    %c0_64 = arith.constant 0 : index
    %c0_65 = arith.constant 0 : index
    %c0_66 = arith.constant 0 : index
    %96 = vector.load %arg19[%c0_64, %c0_65, %c0_66] : memref<1x4x128xf32, #tpu.memory_space<vmem>>, vector<1x4x128xf32>
    tpu.vector_store %arg19[%c0_64, %c0_65, %c0_66], %95 {strides = array<i32>} : memref<1x4x128xf32, #tpu.memory_space<vmem>>, vector<1x4x128xf32>,
    %cst_67 = arith.constant dense<0.000000e+00> : vector<4x128xf32>
    %97 = vector.multi_reduction <add>, %93, %cst_67 [0] : vector<1x4x128xf32> to vector<4x128xf32>
    %cst_68 = arith.constant dense<0.000000e+00> : vector<4x128xf32>
    %98 = vector.multi_reduction <add>, %95, %cst_68 [0] : vector<1x4x128xf32> to vector<4x128xf32>
    %cst_69 = arith.constant dense<0.000000e+00> : vector<4xf32>
    %99 = vector.multi_reduction <add>, %97, %cst_69 [1] : vector<4x128xf32> to vector<4xf32>
    %100 = vector.shape_cast %99 : vector<4xf32> to vector<4x1xf32>
    %cst_70 = arith.constant dense<0.000000e+00> : vector<1xf32>
    %101 = vector.multi_reduction <add>, %100, %cst_70 [0] : vector<4x1xf32> to vector<1xf32>
    %102 = vector.shape_cast %101 : vector<1xf32> to vector<1x1xf32>
    %cst_71 = arith.constant dense<0.000000e+00> : vector<4xf32>
    %103 = vector.multi_reduction <add>, %98, %cst_71 [1] : vector<4x128xf32> to vector<4xf32>
    %104 = vector.shape_cast %103 : vector<4xf32> to vector<4x1xf32>
    %cst_72 = arith.constant dense<0.000000e+00> : vector<1xf32>
    %105 = vector.multi_reduction <add>, %104, %cst_72 [0] : vector<4x1xf32> to vector<1xf32>
    %106 = vector.shape_cast %105 : vector<1xf32> to vector<1x1xf32>
    %c6_i32 = arith.constant 6 : i32
    %107 = vector.broadcast %c6_i32 : i32 to vector<1x128xi32>
    %108 = arith.cmpi eq, %3, %107 : vector<1x128xi32>
    %109 = vector.shape_cast %106 : vector<1x1xf32> to vector<1x1xf32>
    %110 = vector.broadcast %109 : vector<1x1xf32> to vector<1x128xf32>
    %111 = arith.select %108, %110, %88 : vector<1x128xi1>, vector<1x128xf32>
    %c7_i32 = arith.constant 7 : i32
    %112 = vector.broadcast %c7_i32 : i32 to vector<1x128xi32>
    %113 = arith.cmpi eq, %3, %112 : vector<1x128xi32>
    %114 = vector.shape_cast %102 : vector<1x1xf32> to vector<1x1xf32>
    %115 = vector.broadcast %114 : vector<1x1xf32> to vector<1x128xf32>
    %116 = arith.select %113, %115, %111 : vector<1x128xi1>, vector<1x128xf32>
    %c0_73 = arith.constant 0 : index
    %c0_74 = arith.constant 0 : index
    %117 = vector.load %arg21[%c0_73, %c0_74] : memref<8x128xf32, #tpu.memory_space<vmem>>, vector<8x128xf32>
    %118 = vector.broadcast %116 : vector<1x128xf32> to vector<8x128xf32>
    %119 = arith.addf %117, %118 : vector<8x128xf32>
    %c0_75 = arith.constant 0 : index
    %c0_76 = arith.constant 0 : index
    %120 = vector.load %arg21[%c0_75, %c0_76] : memref<8x128xf32, #tpu.memory_space<vmem>>, vector<8x128xf32>
    tpu.vector_store %arg21[%c0_75, %c0_76], %119 {strides = array<i32>} : memref<8x128xf32, #tpu.memory_space<vmem>>, vector<8x128xf32>,
    %c0_i32_77 = arith.constant 0 : i32
    %121 = arith.cmpi eq, %arg0, %c0_i32_77 : i32
    %c0_i32_78 = arith.constant 0 : i32
    %122 = arith.cmpi eq, %arg1, %c0_i32_78 : i32
    %123 = arith.andi %121, %122 : i1
    %124 = arith.extui %123 : i1 to i32
    %c0_i32_79 = arith.constant 0 : i32
    %125 = arith.cmpi ne, %124, %c0_i32_79 : i32
    scf.if %125 {
      %cst_82 = arith.constant 0.000000e+00 : f32
      %129 = vector.broadcast %cst_82 : f32 to vector<1x128xf32>
      %c0_83 = arith.constant 0 : index
      %c0_84 = arith.constant 0 : index
      %130 = vector.load %arg14[%c0_83, %c0_84] : memref<2x128xf32, #tpu.memory_space<vmem>>, vector<2x128xf32>
      %131 = math.log %130 : vector<2x128xf32>
      %cst_85 = arith.constant dense<0.000000e+00> : vector<2xf32>
      %132 = vector.multi_reduction <add>, %131, %cst_85 [1] : vector<2x128xf32> to vector<2xf32>
      %133 = vector.shape_cast %132 : vector<2xf32> to vector<2x1xf32>
      %cst_86 = arith.constant dense<0.000000e+00> : vector<1xf32>
      %134 = vector.multi_reduction <add>, %133, %cst_86 [0] : vector<2x1xf32> to vector<1xf32>
      %135 = vector.shape_cast %134 : vector<1xf32> to vector<1x1xf32>
      %c8_i32 = arith.constant 8 : i32
      %136 = vector.broadcast %c8_i32 : i32 to vector<1x128xi32>
      %137 = arith.cmpi eq, %3, %136 : vector<1x128xi32>
      %138 = vector.shape_cast %135 : vector<1x1xf32> to vector<1x1xf32>
      %139 = vector.broadcast %138 : vector<1x1xf32> to vector<1x128xf32>
      %140 = arith.select %137, %139, %129 : vector<1x128xi1>, vector<1x128xf32>
      %c0_87 = arith.constant 0 : index
      %c0_88 = arith.constant 0 : index
      %141 = vector.load %arg15[%c0_87, %c0_88] : memref<1x128xf32, #tpu.memory_space<vmem>>, vector<1x128xf32>
      %142 = math.log %141 : vector<1x128xf32>
      %cst_89 = arith.constant dense<0.000000e+00> : vector<1xf32>
      %143 = vector.multi_reduction <add>, %142, %cst_89 [1] : vector<1x128xf32> to vector<1xf32>
      %144 = vector.shape_cast %143 : vector<1xf32> to vector<1x1xf32>
      %cst_90 = arith.constant dense<0.000000e+00> : vector<1xf32>
      %145 = vector.multi_reduction <add>, %144, %cst_90 [0] : vector<1x1xf32> to vector<1xf32>
      %146 = vector.shape_cast %145 : vector<1xf32> to vector<1x1xf32>
      %c9_i32 = arith.constant 9 : i32
      %147 = vector.broadcast %c9_i32 : i32 to vector<1x128xi32>
      %148 = arith.cmpi eq, %3, %147 : vector<1x128xi32>
      %149 = vector.shape_cast %146 : vector<1x1xf32> to vector<1x1xf32>
      %150 = vector.broadcast %149 : vector<1x1xf32> to vector<1x128xf32>
      %151 = arith.select %148, %150, %140 : vector<1x128xi1>, vector<1x128xf32>
      %c0_91 = arith.constant 0 : index
      %c0_92 = arith.constant 0 : index
      %152 = vector.load %arg21[%c0_91, %c0_92] : memref<8x128xf32, #tpu.memory_space<vmem>>, vector<8x128xf32>
      %153 = vector.broadcast %151 : vector<1x128xf32> to vector<8x128xf32>
      %154 = arith.addf %152, %153 : vector<8x128xf32>
      %c0_93 = arith.constant 0 : index
      %c0_94 = arith.constant 0 : index
      %155 = vector.load %arg21[%c0_93, %c0_94] : memref<8x128xf32, #tpu.memory_space<vmem>>, vector<8x128xf32>
      tpu.vector_store %arg21[%c0_93, %c0_94], %154 {strides = array<i32>} : memref<8x128xf32, #tpu.memory_space<vmem>>, vector<8x128xf32>,
    } else {
    }
    %c0_i32_80 = arith.constant 0 : i32
    %126 = arith.cmpi eq, %arg1, %c0_i32_80 : i32
    %127 = arith.extui %126 : i1 to i32
    %c0_i32_81 = arith.constant 0 : i32
    %128 = arith.cmpi ne, %127, %c0_i32_81 : i32
    scf.if %128 {
      %c0_82 = arith.constant 0 : index
      %c0_83 = arith.constant 0 : index
      %129 = vector.load %arg21[%c0_82, %c0_83] : memref<8x128xf32, #tpu.memory_space<vmem>>, vector<8x128xf32>
      %c0_84 = arith.constant 0 : index
      %c0_85 = arith.constant 0 : index
      %130 = vector.load %arg20[%c0_84, %c0_85] : memref<8x128xf32, #tpu.memory_space<vmem>>, vector<8x128xf32>
      tpu.vector_store %arg20[%c0_84, %c0_85], %129 {strides = array<i32>} : memref<8x128xf32, #tpu.memory_space<vmem>>, vector<8x128xf32>,
    } else {
    }
    return
  }
  func.func @transform_0(%arg0: i32, %arg1: i32) -> (i32, i32, i32) {
    %c0_i32 = arith.constant 0 : i32
    %c0_i32_0 = arith.constant 0 : i32
    return %arg0, %arg1, %c0_i32 : i32, i32, i32
  }
  func.func @transform_1(%arg0: i32, %arg1: i32) -> (i32, i32, i32) {
    %c0_i32 = arith.constant 0 : i32
    %c0_i32_0 = arith.constant 0 : i32
    return %arg0, %arg1, %c0_i32 : i32, i32, i32
  }
  func.func @transform_2(%arg0: i32, %arg1: i32) -> (i32, i32, i32) {
    %c0_i32 = arith.constant 0 : i32
    %c0_i32_0 = arith.constant 0 : i32
    %c0_i32_1 = arith.constant 0 : i32
    return %arg0, %c0_i32, %c0_i32_0 : i32, i32, i32
  }
  func.func @transform_3(%arg0: i32, %arg1: i32) -> (i32, i32, i32) {
    %c0_i32 = arith.constant 0 : i32
    %c0_i32_0 = arith.constant 0 : i32
    return %arg0, %arg1, %c0_i32 : i32, i32, i32
  }
  func.func @transform_4(%arg0: i32, %arg1: i32) -> (i32, i32, i32) {
    %c0_i32 = arith.constant 0 : i32
    %c0_i32_0 = arith.constant 0 : i32
    return %arg0, %arg1, %c0_i32 : i32, i32, i32
  }
  func.func @transform_5(%arg0: i32, %arg1: i32) -> (i32, i32, i32) {
    %c0_i32 = arith.constant 0 : i32
    %c0_i32_0 = arith.constant 0 : i32
    %c0_i32_1 = arith.constant 0 : i32
    return %arg0, %c0_i32, %c0_i32_0 : i32, i32, i32
  }
  func.func @transform_6(%arg0: i32, %arg1: i32) -> (i32, i32, i32) {
    %c0_i32 = arith.constant 0 : i32
    %c0_i32_0 = arith.constant 0 : i32
    return %arg0, %arg1, %c0_i32 : i32, i32, i32
  }
  func.func @transform_7(%arg0: i32, %arg1: i32) -> (i32, i32, i32) {
    %c0_i32 = arith.constant 0 : i32
    %c0_i32_0 = arith.constant 0 : i32
    return %arg0, %arg1, %c0_i32 : i32, i32, i32
  }
  func.func @transform_8(%arg0: i32, %arg1: i32) -> (i32, i32, i32) {
    %c0_i32 = arith.constant 0 : i32
    %c0_i32_0 = arith.constant 0 : i32
    %c0_i32_1 = arith.constant 0 : i32
    return %arg0, %c0_i32, %c0_i32_0 : i32, i32, i32
  }
  func.func @transform_9(%arg0: i32, %arg1: i32) -> (i32, i32, i32) {
    %c0_i32 = arith.constant 0 : i32
    %c0_i32_0 = arith.constant 0 : i32
    return %arg0, %arg1, %c0_i32 : i32, i32, i32
  }
  func.func @transform_10(%arg0: i32, %arg1: i32) -> (i32, i32, i32) {
    %c0_i32 = arith.constant 0 : i32
    %c0_i32_0 = arith.constant 0 : i32
    return %arg0, %arg1, %c0_i32 : i32, i32, i32
  }
  func.func @transform_11(%arg0: i32, %arg1: i32) -> (i32, i32, i32) {
    %c0_i32 = arith.constant 0 : i32
    %c0_i32_0 = arith.constant 0 : i32
    %c0_i32_1 = arith.constant 0 : i32
    return %arg0, %c0_i32, %c0_i32_0 : i32, i32, i32
  }
  func.func @transform_12(%arg0: i32, %arg1: i32) -> (i32, i32) {
    %c0_i32 = arith.constant 0 : i32
    %c0_i32_0 = arith.constant 0 : i32
    %c0_i32_1 = arith.constant 0 : i32
    return %c0_i32, %c0_i32_0 : i32, i32
  }
  func.func @transform_13(%arg0: i32, %arg1: i32) -> (i32, i32) {
    %c0_i32 = arith.constant 0 : i32
    %c0_i32_0 = arith.constant 0 : i32
    %c0_i32_1 = arith.constant 0 : i32
    return %c0_i32, %c0_i32_0 : i32, i32
  }
  func.func @transform_14(%arg0: i32, %arg1: i32) -> (i32, i32, i32) {
    %c0_i32 = arith.constant 0 : i32
    %c0_i32_0 = arith.constant 0 : i32
    return %arg0, %arg1, %c0_i32 : i32, i32, i32
  }
  func.func @transform_15(%arg0: i32, %arg1: i32) -> (i32, i32, i32) {
    %c0_i32 = arith.constant 0 : i32
    %c0_i32_0 = arith.constant 0 : i32
    return %arg0, %arg1, %c0_i32 : i32, i32, i32
  }
  func.func @transform_16(%arg0: i32, %arg1: i32) -> (i32, i32, i32) {
    %c0_i32 = arith.constant 0 : i32
    %c0_i32_0 = arith.constant 0 : i32
    return %arg0, %arg1, %c0_i32 : i32, i32, i32
  }
  func.func @transform_17(%arg0: i32, %arg1: i32) -> (i32, i32, i32) {
    %c0_i32 = arith.constant 0 : i32
    %c0_i32_0 = arith.constant 0 : i32
    return %arg0, %arg1, %c0_i32 : i32, i32, i32
  }
  func.func @transform_18(%arg0: i32, %arg1: i32) -> (i32, i32) {
    %c0_i32 = arith.constant 0 : i32
    %c0_i32_0 = arith.constant 0 : i32
    return %arg0, %c0_i32 : i32, i32
  }
}

</mosaic_0001>

<bundles_post_ra>
// kernel: spatial_medo_loss.1
= control target key start
LH: loop header
LB: loop body
LE: loop exit
PB: predicated region body
PF: predicated region fallthrough
CT: control target
= control target key end

     0   :  { %s1739_s27 = smov 0   ;;  %s1741_s28 = smov 0   ;;  %s1900_s0 = inlined_call_operand.vmem [shape: f32[2,4,256], index: 0, kind: input, shape index: {}]   ;;  %s1901_s1 = inlined_call_operand.vmem [shape: f32[2,4,256], index: 1, kind: input, shape index: {}]   ;;  %s1902_s2 = inlined_call_operand.vmem [shape: f32[2,1,256], index: 2, kind: input, shape index: {}]   ;;  %s1903_s3 = inlined_call_operand.vmem [shape: f32[2,4,128], index: 3, kind: input, shape index: {}]   ;;  %s1904_s4 = inlined_call_operand.vmem [shape: f32[2,4,128], index: 4, kind: input, shape index: {}]   ;;  %s1905_s5 = inlined_call_operand.vmem [shape: f32[2,1,128], index: 5, kind: input, shape index: {}]   ;;  %s1906_s6 = inlined_call_operand.vmem [shape: f32[2,4,128], index: 6, kind: input, shape index: {}]   ;;  %s1907_s7 = inlined_call_operand.vmem [shape: f32[2,4,128], index: 7, kind: input, shape index: {}]   ;;  %s1908_s8 = inlined_call_operand.vmem [shape: f32[2,1,128], index: 8, kind: input, shape index: {}]   ;;  %s1909_s9 = inlined_call_operand.vmem [shape: f32[2,4,128], index: 9, kind: input, shape index: {}]   ;;  %s1910_s10 = inlined_call_operand.vmem [shape: f32[2,4,128], index: 10, kind: input, shape index: {}]   ;;  %s1911_s11 = inlined_call_operand.vmem [shape: f32[2,1,128], index: 11, kind: input, shape index: {}]   ;;  %s1912_s12 = inlined_call_operand.vmem [shape: f32[2,128], index: 12, kind: input, shape index: {}]   ;;  %s1913_s13 = inlined_call_operand.vmem [shape: f32[1,128], index: 13, kind: input, shape index: {}]   ;;  %s1914_s14 = inlined_call_operand.vmem [shape: f32[2,4,256], index: 14, kind: output, shape index: {0}]   ;;  %s1915_s15 = inlined_call_operand.vmem [shape: f32[2,4,128], index: 15, kind: output, shape index: {1}]   ;;  %s1916_s16 = inlined_call_operand.vmem [shape: f32[2,4,128], index: 16, kind: output, shape index: {2}]   ;;  %s1917_s17 = inlined_call_operand.vmem [shape: f32[2,4,128], index: 17, kind: output, shape index: {3}]   ;;  %s1918_s18 = inlined_call_operand.vmem [shape: f32[16,128], index: 18, kind: output, shape index: {4}]  }
   0x1   :  { %1921 = sst [smem:[#allocation6_spill]] %s1900_s0  ;;  %s1743_s29 = smov 0  }
   0x2   :  { %1922 = sst [smem:[#allocation7_spill]] %s1901_s1 }
   0x3   :  { %1923 = sst [smem:[#allocation8_spill]] %s1902_s2 }
   0x4   :  { %1924 = sst [smem:[#allocation9_spill]] %s1903_s3 }
   0x5   :  { %1925 = sst [smem:[#allocation10_spill]] %s1904_s4 }
   0x6   :  { %1926 = sst [smem:[#allocation11_spill]] %s1905_s5 }
   0x7   :  { %1927 = sst [smem:[#allocation12_spill]] %s1913_s13 }
   0x8 LB: > { %1928 = sst [smem:[#allocation3_spill]] %s1638_s28  ;;  %s41_s30 = sadd.s32 1, %s1638_s28  ;;  %s1642_s29 = sphi %s1743_s29, %s29_s29   ;;  %s1638_s28 = sphi %s1741_s28, %s1940_s28   ;;  %s1634_s27 = sphi %s1739_s27, %s1939_s27  }
   0x9   : > { %1929 = sst [smem:[#allocation4_spill]] %s1642_s29  ;;  %p1563_p0 = scmp.ge.s32.totalorder %s1642_s29, 1 }
   0xa   : > { %p43_p1 = scmp.ge.s32.totalorder %s41_s30, 2  ;;  %p680_p2 = scmp.lt.s32.totalorder %s1642_s29, 3 }
   0xc   : > { %s1942_s30 = smov (%p43_p1, %s41_s30), 0  ;;  %p681_p3 = pnand %p1563_p0, %p680_p2 }
   0xd   : > { %1930 = sst [smem:[#allocation5_spill]] %s1942_s30  ;;  %p831_p4 = scmp.lt.s32.totalorder (!%p681_p3), %s1634_s27, 1  ;;  %v943_v0 = vlaneseq (!%p681_p3)  ;;  %vm968_vm0 = vcmask (!%p681_p3), 1043456  }
   0xe   : > { %684 = sbr.rel (%p681_p3) target bundleno = 371 (0x173), region = 76  ;;  %s1931_s5 = sld [smem:[#allocation11_spill]] (!%p681_p3) }
   0xf   : > { %v1771_v1 = vshrl.u32 (!%p681_p3), %v943_v0, 7  ;;  %s1932_s3 = sld [smem:[#allocation9_spill]] (!%p681_p3)  ;;  %s1933_s4 = sld [smem:[#allocation10_spill]] (!%p681_p3) }
  0x10   : > { %s1934_s22 = sld [smem:[#allocation6_spill]] (!%p681_p3)  ;;  %s1935_s24 = sld [smem:[#allocation7_spill]] (!%p681_p3) }
  0x11   : > { %v953_v8 = vsub.s32 (!%p681_p3), 0, %v1771_v1  ;;  %v957_v9 = vsub.s32 (!%p681_p3), 1, %v1771_v1  ;;  %p1120_p5 = scmp.eq.s32.totalorder (!%p681_p3), %s1634_s27, 0 }
  0x15   : > { %s1761_s0 = scalar_select %p831_p4, %s1634_s27, 1 }
  0x16   : > { %s1937_s29 = sld [smem:[#allocation12_spill]] (%p1120_p5)  ;;  %vm1128_vm9 = vcmask (%p1120_p5), 1041408   ;;  %vm1144_vm10 = vcmask (%p1120_p5), 1040384  }
  0x17   : > { %s1764_s19 = sshll.u32 %s1761_s0, 2  ;;  %s869_s21 = scalar_lea.vmem %s1931_s5, %s1761_s0 }
  0x18   : > { %s859_s23 = scalar_lea.vmem %s1932_s3, %s1764_s19  ;;  %s866_s26 = scalar_lea.vmem %s1933_s4, %s1764_s19  ;;  %v1581_v5 = vld [vmem:[%s869_s21] ss:$0 sm:$0xff] }
  0x19   : > { %v1000_v2 = vld [vmem:[%s859_s23] sm:$0xf]  ;;  %s1782_s30 = sshll.u32 %s1761_s0, 3  ;;  %s876_s13 = scalar_lea.vmem %s1906_s6, %s1764_s19 }
  0x1a   : > { %v1001_v3 = vld [vmem:[%s866_s26] sm:$0xf]  ;;  %s839_s2 = scalar_lea.vmem %s1934_s22, %s1782_s30  ;;  %s848_s25 = scalar_lea.vmem %s1935_s24, %s1782_s30 }
  0x1b   : > { %v1003_v4 = vsub.f32 %v1000_v2, %v1001_v3  ;;  %s937_s4 = scalar_lea.vmem %s1918_s18, %s1782_s30  ;;  %v945_v6 = vld [vmem:[%s839_s2] sm:$0xff]  ;;  %s883_s21 = scalar_lea.vmem %s1907_s7, %s1764_s19 }
  0x1c   : > { %v946_v7 = vld [vmem:[%s848_s25] sm:$0xff]  ;;  %s1568_s1 = sshll.u32 %s1761_s0, 1  ;;  %s919_s28 = scalar_lea.vmem %s1915_s15, %s1764_s19 }
  0x1d   : > { %v1004_v10 = vmul.f32 %v1003_v4, %v1003_v4  ;;  %v948_v11 = vsub.f32 %v945_v6, %v946_v7  ;;  %v1039_v12 = vld [vmem:[%s876_s13] sm:$0xf]  ;;  %s1936_s24 = sld [smem:[#allocation8_spill]]  ;;  %s893_s26 = scalar_lea.vmem %s1909_s9, %s1764_s19 }
  0x1e   : > { %v1040_v13 = vld [vmem:[%s883_s21] sm:$0xf]  ;;  %s900_s20 = scalar_lea.vmem %s1910_s10, %s1764_s19  ;;  %s886_s22 = scalar_lea.vmem %s1908_s8, %s1761_s0 }
  0x1f   : > { %v1015_v14 = vsel %vm968_vm0, %v1004_v10, 0.0  ;;  %v1011_v15 = vmul.f32 %v1581_v5, %v1004_v10  ;;  %v949_v16 = vmul.f32 %v948_v11, %v948_v11  ;;  %v1042_v17 = vsub.f32 %v1039_v12, %v1040_v13  ;;  %v1078_v21 = vld [vmem:[%s893_s26] sm:$0xf]  ;;  %s926_s13 = scalar_lea.vmem %s1916_s16, %s1764_s19  ;;  %s912_s3 = scalar_lea.vmem %s1914_s14, %s1782_s30 }
  0x20   : > { %1016 = vadd.xlane.f32.xlu1 %v1015_v14  ;;  %v1079_v22 = vld [vmem:[%s900_s20] sm:$0xf]  ;;  %s933_s20 = scalar_lea.vmem %s1917_s17, %s1764_s19 }
  0x21   : > { %v1025_v23 = vsel %vm968_vm0, %v1011_v15, 0.0  ;;  %1012 = vst [vmem:[%s919_s28] sm:$0xf] %v1011_v15  ;;  %v966_v24 = vcombine.high %v949_v16, %v949_v16  ;;  %v969_v25 = vsel %vm968_vm0, %v949_v16, 0.0  ;;  %v1043_v26 = vmul.f32 %v1042_v17, %v1042_v17  ;;  %v1582_v27 = vld [vmem:[%s886_s22] ss:$0 sm:$0xff] }
  0x22   : > { %v1081_v29 = vsub.f32 %v1078_v21, %v1079_v22 }
  0x23   : > { %s852_s25 = scalar_lea.vmem %s1936_s24, %s1568_s1  ;;  %s903_s24 = scalar_lea.vmem %s1911_s11, %s1761_s0  ;;  %v970_v30 = vsel %vm968_vm0, %v966_v24, 0.0  ;;  %v1050_v31 = vmul.f32 %v1582_v27, %v1043_v26  ;;  %v1054_v36 = vsel %vm968_vm0, %v1043_v26, 0.0 }
  0x24   : > { %v947_v18 = vld [vmem:[%s852_s25] sm:$0x3]  ;;  %1026 = vadd.xlane.f32.xlu1 %v1025_v23  ;;  %v971_v33 = vadd.f32 %v970_v30, %v969_v25  ;;  %v1082_v35 = vmul.f32 %v1081_v29, %v1081_v29 }
  0x25   : > { %v954_v19 = vrot.slane %v947_v18, %v953_v8  ;;  %v958_v20 = vrot.slane %v947_v18, %v957_v9  ;;  %v1583_v32 = vld [vmem:[%s903_s24] ss:$0 sm:$0xff]  ;;  %1051 = vst [vmem:[%s926_s13] sm:$0xf] %v1050_v31  ;;  %v1064_v43 = vsel %vm968_vm0, %v1050_v31, 0.0  ;;  %v1863_v18 = vand.u32 127, %v943_v0 }
  0x26   : > { %972 = vadd.xlane.f32.xlu0 %v971_v33  ;;  %v1089_v39 = vmul.f32 %v1583_v32, %v1082_v35  ;;  %v1093_v42 = vsel %vm968_vm0, %v1082_v35, 0.0 }
  0x27   : > { %v959_v28 = vcombine.low %v954_v19, %v958_v20  ;;  %vm996_vm1 = vcmp.eq.s32.totalorder %v1863_v18, 0  ;;  %vm998_vm2 = vcmp.eq.s32.totalorder %v1863_v18, 1  ;;  %vm1035_vm3 = vcmp.eq.s32.totalorder %v1863_v18, 2 }
  0x28   : > { %1055 = vadd.xlane.f32.xlu1 %v1054_v36  ;;  %1090 = vst [vmem:[%s933_s20] sm:$0xf] %v1089_v39  ;;  %v1103_v44 = vsel %vm968_vm0, %v1089_v39, 0.0  ;;  %vm1037_vm4 = vcmp.eq.s32.totalorder %v1863_v18, 3  ;;  %vm1074_vm5 = vcmp.eq.s32.totalorder %v1863_v18, 4  ;;  %vm1076_vm6 = vcmp.eq.s32.totalorder %v1863_v18, 5 }
  0x29   : > { %v961_v34 = vmul.f32 %v959_v28, %v949_v16  ;;  %vm1113_vm7 = vcmp.eq.s32.totalorder %v1863_v18, 6  ;;  %vm1115_vm8 = vcmp.eq.s32.totalorder %v1863_v18, 7  ;;  %vm1139_vm11 = vcmp.eq.s32.totalorder (%p1120_p5), %v1863_v18, 8 }
  0x2a   : > { %vm1149_vm12 = vcmp.eq.s32.totalorder (%p1120_p5), %v1863_v18, 9 }
  0x2b   : > { %v982_v37 = vcombine.high %v961_v34, %v961_v34  ;;  %v984_v38 = vsel %vm968_vm0, %v961_v34, 0.0  ;;  %962 = vst [vmem:[%s912_s3] sm:$0xff] %v961_v34 }
  0x2c   : > { %1094 = vadd.xlane.f32.xlu1 %v1093_v42 }
  0x2d   : > { %v985_v40 = vsel %vm968_vm0, %v982_v37, 0.0 }
  0x2e   : > { %v986_v41 = vadd.f32 %v985_v40, %v984_v38 }
  0x30   : > { %987 = vadd.xlane.f32.xlu0 %v986_v41 }
  0x34   : > { %1065 = vadd.xlane.f32.xlu0 %v1064_v43 }
  0x38   : > { %1104 = vadd.xlane.f32.xlu0 %v1103_v44 }
  0xad   : > { %v1017_v45 = vpop.xlane.xlu1 %1016 }
  0xae   : > { %v1018_v46 = vsel %vm968_vm0, %v1017_v45, 0.0 }
  0xaf   : > { %v1019_v51 = vrot.slane %v1018_v46, 4 }
  0xb1   : > { %v1027_v47 = vpop.xlane.xlu1 %1026  ;;  %v1020_v59 = vadd.f32 %v1019_v51, %v1018_v46 }
  0xb2   : > { %v1028_v48 = vsel %vm968_vm0, %v1027_v47, 0.0 }
  0xb3   : > { %v1029_v49 = vrot.slane %v1028_v48, 4  ;;  %v973_v50 = vpop.xlane.xlu0 %972  ;;  %v1021_v6 = vrot.slane %v1020_v59, 2 }
  0xb4   : > { %v974_v52 = vsel %vm968_vm0, %v973_v50, 0.0 }
  0xb5   : > { %v975_v53 = vrot.slane %v974_v52, 4  ;;  %v1056_v54 = vpop.xlane.xlu1 %1055  ;;  %v1030_v56 = vadd.f32 %v1029_v49, %v1028_v48  ;;  %v1022_v19 = vadd.f32 %v1021_v6, %v1020_v59 }
  0xb6   : > { %v1057_v55 = vsel %vm968_vm0, %v1056_v54, 0.0 }
  0xb7   : > { %v976_v57 = vadd.f32 %v975_v53, %v974_v52  ;;  %v1058_v58 = vrot.slane %v1057_v55, 4  ;;  %v1031_v3 = vrot.slane %v1030_v56, 2  ;;  %v1023_v31 = vrot.slane %v1022_v19, 1 }
  0xb9   : > { %v1095_v61 = vpop.xlane.xlu1 %1094  ;;  %v977_v62 = vrot.slane %v976_v57, 2  ;;  %v1059_v4 = vadd.f32 %v1058_v58, %v1057_v55  ;;  %v1032_v14 = vadd.f32 %v1031_v3, %v1030_v56  ;;  %v1024_v41 = vadd.f32 %v1023_v31, %v1022_v19  ;;  %v1125_v56 = vld [vmem:[%s1912_s12] sm:$0x3] (%p1120_p5) }
  0xba   : > { %v1096_v2 = vsel %vm968_vm0, %v1095_v61, 0.0  ;;  %1616 = vlog2.f32 (%p1120_p5), %v1125_v56 }
  0xbb   : > { %v1097_v7 = vrot.slane %v1096_v2, 4  ;;  %v978_v11 = vadd.f32 %v977_v62, %v976_v57  ;;  %v1060_v15 = vrot.slane %v1059_v4, 2  ;;  %v1033_v27 = vrot.slane %v1032_v14, 1  ;;  %v1141_v57 = vld [vmem:[%s1937_s29] sm:$0x1] (%p1120_p5) }
  0xbc   : > { %1618 = vlog2.f32 (%p1120_p5), %v1141_v57 }
  0xbd   : > { %v988_v60 = vpop.xlane.xlu0 %987  ;;  %v1098_v12 = vadd.f32 %v1097_v7, %v1096_v2  ;;  %v979_v25 = vrot.slane %v978_v11, 1  ;;  %v1061_v28 = vadd.f32 %v1060_v15, %v1059_v4  ;;  %v1034_v37 = vadd.f32 %v1033_v27, %v1032_v14 }
  0xbe   : > { %v989_v63 = vsel %vm968_vm0, %v988_v60, 0.0 }
  0xbf   : > { %v990_v5 = vrot.slane %v989_v63, 4  ;;  %v1099_v22 = vrot.slane %v1098_v12, 2  ;;  %v980_v35 = vadd.f32 %v979_v25, %v978_v11  ;;  %v1062_v38 = vrot.slane %v1061_v28, 1 }
  0xc1   : > { %v1066_v9 = vpop.xlane.xlu0 %1065  ;;  %v991_v10 = vadd.f32 %v990_v5, %v989_v63  ;;  %v1100_v33 = vadd.f32 %v1099_v22, %v1098_v12  ;;  %v1063_v49 = vadd.f32 %v1062_v38, %v1061_v28 }
  0xc2   : > { %v1067_v13 = vsel %vm968_vm0, %v1066_v9, 0.0 }
  0xc3   : > { %v992_v16 = vrot.slane %v991_v10, 2  ;;  %v1068_v17 = vrot.slane %v1067_v13, 4  ;;  %v1101_v45 = vrot.slane %v1100_v33, 1 }
  0xc4   : > { %v1617_v58 = vpop.eup (%p1120_p5), %1616 }
  0xc5   : > { %v1105_v20 = vpop.xlane.xlu0 %1104  ;;  %v993_v21 = vadd.f32 %v992_v16, %v991_v10  ;;  %v1069_v23 = vadd.f32 %v1068_v17, %v1067_v13  ;;  %v1102_v52 = vadd.f32 %v1101_v45, %v1100_v33  ;;  %v1127_v60 = vmul.f32 (%p1120_p5), 0.6931472, %v1617_v58 }
  0xc6   : > { %v1106_v24 = vsel %vm968_vm0, %v1105_v20, 0.0  ;;  %v1619_v59 = vpop.eup (%p1120_p5), %1618 }
  0xc7   : > { %v1107_v26 = vrot.slane %v1106_v24, 4  ;;  %v994_v29 = vrot.slane %v993_v21, 1  ;;  %v1070_v30 = vrot.slane %v1069_v23, 2  ;;  %v1143_v61 = vmul.f32 (%p1120_p5), 0.6931472, %v1619_v59 }
  0xc8   : > { %v1129_v62 = vsel (%p1120_p5), %vm1128_vm9, %v1127_v60, 0.0 }
  0xc9   : > { %v1108_v32 = vadd.f32 %v1107_v26, %v1106_v24  ;;  %v995_v0 = vadd.f32 %v994_v29, %v993_v21  ;;  %v1071_v34 = vadd.f32 %v1070_v30, %v1069_v23  ;;  %1130 = vadd.xlane.f32.xlu0 (%p1120_p5), %v1129_v62  ;;  %v1145_v63 = vsel (%p1120_p5), %vm1144_vm10, %v1143_v61, 0.0 }
  0xcb   : > { %v1109_v36 = vrot.slane %v1108_v32, 2  ;;  %v997_v39 = vsel %vm996_vm1, %v995_v0, 0.0  ;;  %v1072_v40 = vrot.slane %v1071_v34, 1 }
  0xcc   : > { %v999_v42 = vsel %vm998_vm2, %v980_v35, %v997_v39 }
  0xcd   : > { %v1110_v43 = vadd.f32 %v1109_v36, %v1108_v32  ;;  %v1036_v44 = vsel %vm1035_vm3, %v1034_v37, %v999_v42  ;;  %v1073_v46 = vadd.f32 %v1072_v40, %v1071_v34  ;;  %1146 = vadd.xlane.f32.xlu0 (%p1120_p5), %v1145_v63 }
  0xce   : > { %v1038_v47 = vsel %vm1037_vm4, %v1024_v41, %v1036_v44 }
  0xcf   : > { %v1111_v48 = vrot.slane %v1110_v43, 1  ;;  %v1075_v50 = vsel %vm1074_vm5, %v1073_v46, %v1038_v47  ;;  %1124 = sbr.rel (!%p1120_p5) target bundleno = 363 (0x16b), region = 84 }
  0xd0   : > { %v1077_v53 = vsel %vm1076_vm6, %v1063_v49, %v1075_v50 }
  0xd1   : > { %v1112_v51 = vadd.f32 %v1111_v48, %v1110_v43 }
  0xd3   : > { %v1114_v54 = vsel %vm1113_vm7, %v1112_v51, %v1077_v53 }
  0xd4   : > { %v1116_v55 = vsel %vm1115_vm8, %v1102_v52, %v1114_v54 }
  0xd5   : > { %1119 = vst [vmem:[#allocation2] sm:$0xff] %v1116_v55 }
  0xdc   : > { %v1151_v13 = vld [vmem:[#allocation2] sm:$0xff] }
 0x156   : > { %v1131_v2 = vpop.xlane.xlu0 %1130 }
 0x157   : > { %v1132_v3 = vsel %vm1128_vm9, %v1131_v2, 0.0 }
 0x158   : > { %v1133_v4 = vrot.slane %v1132_v3, 4 }
 0x15a   : > { %v1134_v5 = vadd.f32 %v1133_v4, %v1132_v3  ;;  %v1147_v11 = vpop.xlane.xlu0 %1146 }
 0x15c   : > { %v1135_v6 = vrot.slane %v1134_v5, 2 }
 0x15e   : > { %v1136_v7 = vadd.f32 %v1135_v6, %v1134_v5 }
 0x160   : > { %v1137_v9 = vrot.slane %v1136_v7, 1 }
 0x162   : > { %v1138_v10 = vadd.f32 %v1137_v9, %v1136_v7 }
 0x164   : > { %v1140_v12 = vsel %vm1139_vm11, %v1138_v10, 0.0 }
 0x165   : > { %v1150_v14 = vsel %vm1149_vm12, %v1147_v11, %v1140_v12 }
 0x166   : > { %v1155_v15 = vrot.slane %v1150_v14, %v953_v8 }
 0x168   : > { %v1156_v16 = vadd.f32 %v1155_v15, %v1151_v13 }
 0x16a   : > { %1157 = vst [vmem:[#allocation2] sm:$0xff] %v1156_v16 }
 0x16b PF:  {}
 0x171   : > { %v1161_v17 = vld [vmem:[#allocation2] sm:$0xff] }
 0x172   : > { %1162 = vst [vmem:[%s937_s4] sm:$0xff] %v1161_v17 }
 0x173 PF: > { %s1938_s24 = sld [smem:[#allocation4_spill]]  ;;  %s1939_s27 = sld [smem:[#allocation3_spill]] }
 0x174   : > { %s1940_s28 = sld [smem:[#allocation5_spill]] }
 0x179   : > { %s29_s29 = sadd.s32 1, %s1938_s24  }
 0x17a   : > { %p26_p6 = scmp.ge.s32.totalorder %s29_s29, 4  }
 0x17c   :  { %28 = sbr.rel (!%p26_p6) target bundleno = 8 (0x8), region = 199 }

</bundles_post_ra>
